<compile_context>
chip_gen: v7x
topology: tpu7x:2x2x1
jax: 0.10.0
libtpu: 0.0.40
codegen_flags: <defaults>
</compile_context>

<pallas_src>
import functools

import jax
import jax.numpy as jnp
from jax import lax
from jax.experimental import pallas as pl
from jax.experimental.pallas import tpu as pltpu


def _matmul_scale_bias(x_ref, v_ref, s_ref, b_ref, o_ref, acc_ref):
    k = pl.program_id(2)

    @pl.when(k == 0)
    def _():
        acc_ref[...] = jnp.zeros_like(acc_ref)

    # (tm, tk) . (tn, tk) contracted over K -> (tm, tn); no in-kernel transpose.
    acc_ref[...] += lax.dot_general(
        x_ref[...], v_ref[...],
        dimension_numbers=(((1,), (1,)), ((), ())),
        preferred_element_type=jnp.float32)

    @pl.when(k == pl.num_programs(2) - 1)
    def _():
        out = acc_ref[...] * s_ref[...]          # per-column weight-norm scale
        if b_ref is not None:
            out = out + b_ref[...]
        o_ref[...] = out.astype(o_ref.dtype)


def _kernel_with_bias(x_ref, v_ref, s_ref, b_ref, o_ref, acc_ref):
    _matmul_scale_bias(x_ref, v_ref, s_ref, b_ref, o_ref, acc_ref)


def _kernel_no_bias(x_ref, v_ref, s_ref, o_ref, acc_ref):
    _matmul_scale_bias(x_ref, v_ref, s_ref, None, o_ref, acc_ref)


def _round_up(x, m):
    return ((x + m - 1) // m) * m


def _sublane_align(dtype):
    itemsize = jnp.dtype(dtype).itemsize
    if itemsize >= 4:
        return 8
    if itemsize == 2:
        return 16
    return 32


def _pick_tile(dim, preferred, align):
    """Bounded tile choice: min(preferred, round_up(dim, align)). The caller
    pads the dimension up to a multiple of the returned tile, so the tile
    never balloons to a huge non-divisible dimension (VMEM stays bounded)."""
    padded = _round_up(dim, align)
    if padded <= preferred:
        return padded
    return max(align, (preferred // align) * align)


@functools.partial(jax.jit, static_argnames=("tm", "tn", "tk"))
def weight_norm_linear(x, weight_v, weight_g, bias=None, *,
                       tm=512, tn=512, tk=1024):
    B, K = x.shape
    N, K2 = weight_v.shape
    assert K == K2

    # --- weight-norm hoisted into the wrapper (fused by XLA, one N*K pass) ---
    sq = jnp.sum(weight_v.astype(jnp.float32) ** 2, axis=1)          # (N,)
    norm = jnp.maximum(jnp.sqrt(sq), 1e-12)                          # F.normalize eps
    scale = (weight_g.astype(jnp.float32) / norm).reshape(1, N)      # (1, N) lane-dense

    # --- dtype-aware, bounded tiles; pad shapes up to tile multiples ---------
    sub = _sublane_align(x.dtype)
    tm = _pick_tile(B, tm, sub)
    tn = _pick_tile(N, tn, 128)
    tk = _pick_tile(K, tk, 128)

    Bp, Np, Kp = _round_up(B, tm), _round_up(N, tn), _round_up(K, tk)

    xp = x if (Bp == B and Kp == K) else jnp.pad(x, ((0, Bp - B), (0, Kp - K)))
    vp = (weight_v if (Np == N and Kp == K)
          else jnp.pad(weight_v, ((0, Np - N), (0, Kp - K))))
    sp = scale if Np == N else jnp.pad(scale, ((0, 0), (0, Np - N)))

    has_bias = bias is not None
    inputs = [xp, vp, sp]
    in_specs = [
        pl.BlockSpec((tm, tk), lambda i, j, k: (i, k)),   # x
        pl.BlockSpec((tn, tk), lambda i, j, k: (j, k)),   # v (RHS, contract K)
        pl.BlockSpec((1, tn), lambda i, j, k: (0, j)),    # scale
    ]
    if has_bias:
        b2d = bias.astype(jnp.float32).reshape(1, N)
        if Np != N:
            b2d = jnp.pad(b2d, ((0, 0), (0, Np - N)))
        inputs.append(b2d)
        in_specs.append(pl.BlockSpec((1, tn), lambda i, j, k: (0, j)))
        kernel = _kernel_with_bias
    else:
        kernel = _kernel_no_bias

    grid = (Bp // tm, Np // tn, Kp // tk)

    # --- footprint-derived VMEM budget (double-buffered x/v/out + f32 acc) ---
    x_bytes = jnp.dtype(x.dtype).itemsize
    v_bytes = jnp.dtype(weight_v.dtype).itemsize
    footprint = (2 * tm * tk * x_bytes          # x tiles (double-buffered)
                 + 2 * tn * tk * v_bytes        # v tiles
                 + 2 * tm * tn * x_bytes        # out tiles
                 + tm * tn * 4                  # f32 accumulator scratch
                 + 4 * tn * 4 * 2)              # scale (+ bias) rows
    vmem_limit = max(int(footprint * 1.5), 32 * 1024 * 1024)

    out = pl.pallas_call(
        kernel,
        out_shape=jax.ShapeDtypeStruct((Bp, Np), x.dtype),
        grid_spec=pltpu.PrefetchScalarGridSpec(
            num_scalar_prefetch=0,
            grid=grid,
            in_specs=in_specs,
            out_specs=pl.BlockSpec((tm, tn), lambda i, j, k: (i, j)),
            scratch_shapes=[pltpu.VMEM((tm, tn), jnp.float32)],
        ),
        compiler_params=pltpu.CompilerParams(
            dimension_semantics=("parallel", "parallel", "arbitrary"),
            vmem_limit_bytes=vmem_limit,
        ),
    )(*inputs)

    if Bp != B or Np != N:
        out = out[:B, :N]
    return out


def reference(x, weight_v, weight_g, bias):
    norm = jnp.maximum(
        jnp.sqrt(jnp.sum(weight_v.astype(jnp.float32) ** 2, axis=1,
                         keepdims=True)), 1e-12)
    w = (weight_v / norm) * weight_g[:, None]
    out = x @ w.T
    if bias is not None:
        out = out + bias[None, :]
    return out


if __name__ == "__main__":
    key = jax.random.PRNGKey(0)
    k_x, k_v = jax.random.split(key)

    batch = 8
    in_features = 32
    out_features = 16

    # Matches the module's __init__: weight_g = ones(out), weight_v = randn(out, in),
    # bias = zeros(out).
    x = jax.random.normal(k_x, (batch, in_features), dtype=jnp.float32)
    weight_v = jax.random.normal(k_v, (out_features, in_features),
                                 dtype=jnp.float32)
    weight_g = jnp.ones((out_features,), dtype=jnp.float32)
    bias = jnp.zeros((out_features,), dtype=jnp.float32)

    out = jax.block_until_ready(weight_norm_linear(x, weight_v, weight_g, bias))
    ref = reference(x, weight_v, weight_g, bias)
    assert out.shape == (batch, out_features)
    assert jnp.allclose(out, ref, atol=1e-5, rtol=1e-5), "mismatch vs reference"

    # Also exercise the bias=None path once.
    out_nb = jax.block_until_ready(weight_norm_linear(x, weight_v, weight_g, None))
    ref_nb = reference(x, weight_v, weight_g, None)
    assert jnp.allclose(out_nb, ref_nb, atol=1e-5, rtol=1e-5), "mismatch (no bias)"

    print("KERNEL_OK")
</pallas_src>

<mosaic_0001>
module attributes {stable_mosaic.version = 11 : i64} {
  func.func @_kernel_with_bias(%arg0: i32, %arg1: i32, %arg2: i32, %arg3: memref<8x128xf32, #tpu.memory_space<vmem>>, %arg4: memref<128x128xf32, #tpu.memory_space<vmem>>, %arg5: memref<1x128xf32, #tpu.memory_space<vmem>>, %arg6: memref<1x128xf32, #tpu.memory_space<vmem>>, %arg7: memref<8x128xf32, #tpu.memory_space<vmem>>, %arg8: memref<8x128xf32, #tpu.memory_space<vmem>>) attributes {dimension_semantics = [#tpu.dimension_semantics<parallel>, #tpu.dimension_semantics<parallel>, #tpu.dimension_semantics<arbitrary>], iteration_bounds = array<i64: 1, 1, 1>, scalar_prefetch = 0 : i64, scratch_operands = 1 : i64, tpu.core_type = #tpu.core_type<tc>, window_params = [{transform_indices = @transform_0, window_bounds = array<i64: 8, 128>}, {transform_indices = @transform_1, window_bounds = array<i64: 128, 128>}, {transform_indices = @transform_2, window_bounds = array<i64: 1, 128>}, {transform_indices = @transform_3, window_bounds = array<i64: 1, 128>}, {transform_indices = @transform_4, window_bounds = array<i64: 8, 128>}]} {
    %c0_i32 = arith.constant 0 : i32
    %0 = arith.cmpi eq, %arg2, %c0_i32 : i32
    %1 = arith.extui %0 : i1 to i32
    %c0_i32_0 = arith.constant 0 : i32
    %2 = arith.cmpi ne, %1, %c0_i32_0 : i32
    scf.if %2 {
      %cst_10 = arith.constant 0.000000e+00 : f32
      %12 = vector.broadcast %cst_10 : f32 to vector<8x128xf32>
      %c0_11 = arith.constant 0 : index
      %c0_12 = arith.constant 0 : index
      %13 = vector.load %arg8[%c0_11, %c0_12] : memref<8x128xf32, #tpu.memory_space<vmem>>, vector<8x128xf32>
      tpu.vector_store %arg8[%c0_11, %c0_12], %12 {strides = array<i32>} : memref<8x128xf32, #tpu.memory_space<vmem>>, vector<8x128xf32>,
    } else {
    }
    %c0 = arith.constant 0 : index
    %c0_1 = arith.constant 0 : index
    %3 = vector.load %arg8[%c0, %c0_1] : memref<8x128xf32, #tpu.memory_space<vmem>>, vector<8x128xf32>
    %c0_2 = arith.constant 0 : index
    %c0_3 = arith.constant 0 : index
    %4 = vector.load %arg3[%c0_2, %c0_3] : memref<8x128xf32, #tpu.memory_space<vmem>>, vector<8x128xf32>
    %c0_4 = arith.constant 0 : index
    %c0_5 = arith.constant 0 : index
    %5 = vector.load %arg4[%c0_4, %c0_5] : memref<128x128xf32, #tpu.memory_space<vmem>>, vector<128x128xf32>
    %cst = arith.constant dense<0.000000e+00> : vector<8x128xf32>
    %6 = tpu.matmul %4, %5, %cst {dimension_numbers = #tpu.dot_dimension_numbers<[1], [1], [0], [0], [0, 0, 1, 0], [], []>} : vector<8x128xf32>, vector<128x128xf32>, vector<8x128xf32> -> vector<8x128xf32>
    %7 = arith.addf %3, %6 : vector<8x128xf32>
    %c0_6 = arith.constant 0 : index
    %c0_7 = arith.constant 0 : index
    %8 = vector.load %arg8[%c0_6, %c0_7] : memref<8x128xf32, #tpu.memory_space<vmem>>, vector<8x128xf32>
    tpu.vector_store %arg8[%c0_6, %c0_7], %7 {strides = array<i32>} : memref<8x128xf32, #tpu.memory_space<vmem>>, vector<8x128xf32>,
    %c0_i32_8 = arith.constant 0 : i32
    %9 = arith.cmpi eq, %arg2, %c0_i32_8 : i32
    %10 = arith.extui %9 : i1 to i32
    %c0_i32_9 = arith.constant 0 : i32
    %11 = arith.cmpi ne, %10, %c0_i32_9 : i32
    scf.if %11 {
      %c0_10 = arith.constant 0 : index
      %c0_11 = arith.constant 0 : index
      %12 = vector.load %arg8[%c0_10, %c0_11] : memref<8x128xf32, #tpu.memory_space<vmem>>, vector<8x128xf32>
      %c0_12 = arith.constant 0 : index
      %c0_13 = arith.constant 0 : index
      %13 = vector.load %arg5[%c0_12, %c0_13] : memref<1x128xf32, #tpu.memory_space<vmem>>, vector<1x128xf32>
      %14 = vector.broadcast %13 : vector<1x128xf32> to vector<8x128xf32>
      %15 = arith.mulf %12, %14 : vector<8x128xf32>
      %c0_14 = arith.constant 0 : index
      %c0_15 = arith.constant 0 : index
      %16 = vector.load %arg6[%c0_14, %c0_15] : memref<1x128xf32, #tpu.memory_space<vmem>>, vector<1x128xf32>
      %17 = vector.broadcast %16 : vector<1x128xf32> to vector<8x128xf32>
      %18 = arith.addf %15, %17 : vector<8x128xf32>
      %c0_16 = arith.constant 0 : index
      %c0_17 = arith.constant 0 : index
      %19 = vector.load %arg7[%c0_16, %c0_17] : memref<8x128xf32, #tpu.memory_space<vmem>>, vector<8x128xf32>
      tpu.vector_store %arg7[%c0_16, %c0_17], %18 {strides = array<i32>} : memref<8x128xf32, #tpu.memory_space<vmem>>, vector<8x128xf32>,
    } else {
    }
    return
  }
  func.func @transform_0(%arg0: i32, %arg1: i32, %arg2: i32) -> (i32, i32) {
    %c0_i32 = arith.constant 0 : i32
    return %arg0, %arg2 : i32, i32
  }
  func.func @transform_1(%arg0: i32, %arg1: i32, %arg2: i32) -> (i32, i32) {
    %c0_i32 = arith.constant 0 : i32
    return %arg1, %arg2 : i32, i32
  }
  func.func @transform_2(%arg0: i32, %arg1: i32, %arg2: i32) -> (i32, i32) {
    %c0_i32 = arith.constant 0 : i32
    %c0_i32_0 = arith.constant 0 : i32
    return %c0_i32, %arg1 : i32, i32
  }
  func.func @transform_3(%arg0: i32, %arg1: i32, %arg2: i32) -> (i32, i32) {
    %c0_i32 = arith.constant 0 : i32
    %c0_i32_0 = arith.constant 0 : i32
    return %c0_i32, %arg1 : i32, i32
  }
  func.func @transform_4(%arg0: i32, %arg1: i32, %arg2: i32) -> (i32, i32) {
    %c0_i32 = arith.constant 0 : i32
    return %arg0, %arg1 : i32, i32
  }
}

</mosaic_0001>

<bundles_post_ra>
// kernel: weight_norm_linear.1
= control target key start
LH: loop header
LB: loop body
LE: loop exit
PB: predicated region body
PF: predicated region fallthrough
CT: control target
= control target key end

     0   :  { %v254_v2 = vmov 0.0|0.0   ;;  %vm255_vm0 = vmmov 0   ;;  %v256_v4 = vmov 0.0   ;;  %s352_s0 = inlined_call_operand.vmem [shape: f32[8,128], index: 0, kind: input, shape index: {}]   ;;  %s353_s1 = inlined_call_operand.vmem [shape: f32[128,128], index: 1, kind: input, shape index: {}]   ;;  %s354_s2 = inlined_call_operand.vmem [shape: f32[1,128], index: 2, kind: input, shape index: {}]   ;;  %s355_s3 = inlined_call_operand.vmem [shape: f32[1,128], index: 3, kind: input, shape index: {}]   ;;  %s356_s4 = inlined_call_operand.hbm [shape: f32[8,128], index: 4, kind: output, shape index: {}]  }
   0x1   :  { %v25_v0 = vld [vmem:[%s353_s1] sm:$0xff]  ;;  %v26_v1 = vld [vmem:[%s353_s1 + $0x8] sm:$0xff]  ;;  %202 = vmatprep.subr.bf16.mxu0 %v254_v2  ;;  %199 = vmatprep.mubr.msk.f32.mxu0 %vm255_vm0, %v256_v4  ;;  %v27_v5 = vld [vmem:[%s353_s1 + $0x10] sm:$0xff] }
   0x2   :  { %v203_v3 = vpack.c.bf16 %v26_v1, %v25_v0  ;;  %v28_v6 = vld [vmem:[%s353_s1 + $0x18] sm:$0xff] }
   0x4   :  { %204 = vmatpush3.bf16.xpose.msra.mxu0 %v203_v3 }
   0x5   :  { %205 = vmatprep.subr.bf16.mxu0 %v254_v2 }
   0x6   :  { %9 = vsyncpa [#allocation4], 0  ;;  %v206_v7 = vpack.c.bf16 %v28_v6, %v27_v5  ;;  %v29_v8 = vld [vmem:[%s353_s1 + $0x20] sm:$0xff]  ;;  %v30_v9 = vld [vmem:[%s353_s1 + $0x28] sm:$0xff]  ;;  %s257_s27 = smov [#allocation3]  }
   0x7   :  { %v209_v10 = vpack.c.bf16 %v30_v9, %v29_v8  ;;  %v31_v11 = vld [vmem:[%s353_s1 + $0x30] sm:$0xff]  ;;  %v32_v12 = vld [vmem:[%s353_s1 + $0x38] sm:$0xff]  ;;  %v33_v14 = vld [vmem:[%s353_s1 + $0x40] sm:$0xff]  ;;  %s140_s28 = sshll.u32 %s257_s27, 4  ;;  %s141_s28 = int_to_ptr.vmem [resolvable:$true] %s140_s28 }
   0x8   :  { %v212_v13 = vpack.c.bf16 %v32_v12, %v31_v11  ;;  %v34_v15 = vld [vmem:[%s353_s1 + $0x48] sm:$0xff]  ;;  %v35_v17 = vld [vmem:[%s353_s1 + $0x50] sm:$0xff]  ;;  %v36_v18 = vld [vmem:[%s353_s1 + $0x58] sm:$0xff]  ;;  %p235_p1 = scmp.lt.s32.totalorder %s141_s28, %s141_s28 }
   0x9   :  { %v215_v16 = vpack.c.bf16 %v34_v15, %v33_v14  ;;  %v218_v19 = vpack.c.bf16 %v36_v18, %v35_v17  ;;  %v37_v20 = vld [vmem:[%s353_s1 + $0x60] sm:$0xff]  ;;  %v38_v21 = vld [vmem:[%s353_s1 + $0x68] sm:$0xff]  ;;  %v39_v23 = vld [vmem:[%s353_s1 + $0x70] sm:$0xff] }
   0xa   :  { %v221_v22 = vpack.c.bf16 %v38_v21, %v37_v20  ;;  %v40_v24 = vld [vmem:[%s353_s1 + $0x78] sm:$0xff]  ;;  %v24_v26 = vld [vmem:[%s352_s0] sm:$0xff]  ;;  %s230_s1 = scalar_lea.vmem %s141_s28, 128 }
   0xb   :  { %v224_v25 = vpack.c.bf16 %v40_v24, %v39_v23  ;;  %v148_v27 = vld [vmem:[%s354_s2] ss:$0 sm:$0xff]  ;;  %p231_p0 = scmp.ne.s32.totalorder %s141_s28, %s230_s1  ;;  %p236_p2 = scmp.lt.s32.totalorder %s230_s1, %s230_s1 }
   0xc   :  { %207 = vmatpush3.bf16.xpose.msra.mxu0 %v206_v7  ;;  %v149_v29 = vld [vmem:[%s355_s3] ss:$0 sm:$0xff] }
   0xd   :  { %208 = vmatprep.subr.bf16.mxu0 %v254_v2  ;;  %p237_p3 = por %p236_p2, %p235_p1 }
   0xf   :  { %p238_p4 = pnand %p237_p3, %p231_p0 }
  0x14   :  { %210 = vmatpush3.bf16.xpose.msra.mxu0 %v209_v10 }
  0x15   :  { %211 = vmatprep.subr.bf16.mxu0 %v254_v2 }
  0x1c   :  { %213 = vmatpush3.bf16.xpose.msra.mxu0 %v212_v13 }
  0x1d   :  { %214 = vmatprep.subr.bf16.mxu0 %v254_v2 }
  0x24   :  { %216 = vmatpush3.bf16.xpose.msra.mxu0 %v215_v16 }
  0x25   :  { %217 = vmatprep.subr.bf16.mxu0 %v254_v2 }
  0x2c   :  { %219 = vmatpush3.bf16.xpose.msra.mxu0 %v218_v19 }
  0x2d   :  { %220 = vmatprep.subr.bf16.mxu0 %v254_v2 }
  0x34   :  { %222 = vmatpush3.bf16.xpose.msra.mxu0 %v221_v22 }
  0x35   :  { %223 = vmatprep.subr.bf16.mxu0 %v254_v2 }
  0x3c   :  { %225 = vmatpush3.bf16.xpose.msra.mxu0 %v224_v25 }
  0x43   :  { %200 = vmatmul.mubr.f32.vlgmr.msra.gmra.mrb[0].mxu0 %v24_v26 }
 0x116   :  { %v107_v28 = vpop.f32.mrb[0].mxu0 }
 0x117   :  { %v124_v30 = vmul.f32 %v148_v27, %v107_v28  ;;  %v201_v31 = vpop.f32.mrb[1].mxu0 }
 0x119   :  { %v132_v32 = vadd.f32 %v149_v29, %v124_v30 }
 0x11b   :  { %133 = vst [vmem:[#allocation3] sm:$0xff] %v132_v32 }
 0x11c   :  { %241 = shalt.err (!%p238_p4)
}
 0x11d   :  { %s242_s29 = scalar_lea.hbm %s356_s4, 128 }
 0x11e   :  { %p243_p5 = scmp.ne.s32.totalorder %s356_s4, %s242_s29  ;;  %p246_p6 = scmp.lt.u32.totalorder %s242_s29, %s356_s4 }
 0x120   :  { %p248_p7 = pnand %p246_p6, %p243_p5 }
 0x122   :  { %251 = shalt.err (!%p248_p7)
}
 0x123   :  { %143 = dma.vmem_to_hbm [thread:$0]  %s141_s28, 128, %s356_s4, [#allocation4]  }
 0x124   :  { %252 = dma.done.wait [#allocation4], 128  }
 0x125   :  { %253 = vsyncadd [#allocation4], 4294967168 }
 0x126   :  { %147 = vsyncpa [#allocation4], 1 }

</bundles_post_ra>
